<compile_context>
chip_gen: v5e
topology: v5e:2x2
jax: 0.10.0
libtpu: 0.0.40
codegen_flags: <defaults>
</compile_context>

<pallas_src>
import functools

import jax
import jax.numpy as jnp
from jax import lax
from jax.experimental import pallas as pl
from jax.experimental.pallas import tpu as pltpu

BN_EPS = 1e-5


@functools.lru_cache(maxsize=None)
def _vmem_limit_bytes():
    """Per-generation scoped-VMEM budget: ~3/4 of physical, capped at 96 MiB.
    v5e/v6e (128 MiB physical) -> 96 MiB, v7x (64 MiB) -> 48 MiB."""
    try:
        cap = int(pltpu.get_tpu_info().vmem_capacity_bytes)
    except Exception:
        cap = 64 * 1024 * 1024          # conservative (v7x-sized) fallback
    return int(min(cap * 3 // 4, 96 * 1024 * 1024))


def _compiler_params(*sems):
    return pltpu.CompilerParams(dimension_semantics=tuple(sems),
                                vmem_limit_bytes=_vmem_limit_bytes())


def _largest_divisor_leq(n, cap):
    """Largest divisor of n that is <= cap, preferring multiples of 8 (sublane
    alignment); falls back to the largest divisor, then n itself."""
    cap = max(1, min(cap, n))
    best = 0
    for d in range(cap, 0, -1):
        if n % d == 0:
            if d % 8 == 0:
                return d
            if best == 0:
                best = d
    return best if best else n


# --------------------------------------------------------------------------
# Kernel 1: 1x1 expansion conv (MXU matmul) + folded BN + Swish.
# BN scale is pre-folded into the weight columns, so the epilogue is `+ bias`.
# --------------------------------------------------------------------------
def _expand_kernel(x_ref, w_ref, bias_ref, o_ref):
    y = jnp.dot(x_ref[0], w_ref[...], preferred_element_type=jnp.float32)
    y = y + bias_ref[...]
    y = y * jax.nn.sigmoid(y)                            # Swish
    o_ref[0] = y.astype(o_ref.dtype)


def expand_conv_bn_swish(x_b3, w_scaled, bias, *, row_tile):
    b, hw, cin = x_b3.shape
    cout = w_scaled.shape[1]
    grid = (b, hw // row_tile)
    # TODO(synk): single-buffer the constant weight/bias specs
    # (pipeline_mode=pl.Buffered(1)) once validated, to free VMEM headroom.
    return pl.pallas_call(
        _expand_kernel,
        out_shape=jax.ShapeDtypeStruct((b, hw, cout), x_b3.dtype),
        grid=grid,
        in_specs=[pl.BlockSpec((1, row_tile, cin), lambda i, j: (i, j, 0)),
                  pl.BlockSpec((cin, cout), lambda i, j: (0, 0)),
                  pl.BlockSpec((1, cout), lambda i, j: (0, 0))],
        out_specs=pl.BlockSpec((1, row_tile, cout), lambda i, j: (i, j, 0)),
        compiler_params=_compiler_params("parallel", "parallel"),
    )(x_b3, w_scaled, bias)


# --------------------------------------------------------------------------
# Kernel 2: 1x1 projection conv with the SE gate fused in (and optionally the
# residual add).  Rows are scaled by the per-batch per-channel gate *in bf16*
# (no full-tile f32 upcast) before the MXU matmul; BN scale folded into the
# weight columns.  The residual is read in f32 so the skip path stays exact.
# --------------------------------------------------------------------------
def _project_kernel(y_ref, gate_ref, w_ref, bias_ref, o_ref):
    x = y_ref[0] * gate_ref[0]                           # bf16 * bf16
    y = jnp.dot(x, w_ref[...], preferred_element_type=jnp.float32)
    o_ref[0] = (y + bias_ref[...]).astype(o_ref.dtype)


def _project_res_kernel(y_ref, gate_ref, w_ref, bias_ref, r_ref, o_ref):
    x = y_ref[0] * gate_ref[0]
    y = jnp.dot(x, w_ref[...], preferred_element_type=jnp.float32)
    o_ref[0] = (y + bias_ref[...] + r_ref[0]).astype(o_ref.dtype)


def project_conv_bn(y_b3, gate, w_scaled, bias, *, row_tile, residual=None):
    b, hw, cin = y_b3.shape
    cout = w_scaled.shape[1]
    grid = (b, hw // row_tile)
    out_shape = jax.ShapeDtypeStruct((b, hw, cout), jnp.float32)
    y_spec = pl.BlockSpec((1, row_tile, cin), lambda i, j: (i, j, 0))
    g_spec = pl.BlockSpec((1, 1, cin), lambda i, j: (i, 0, 0))
    w_spec = pl.BlockSpec((cin, cout), lambda i, j: (0, 0))
    b_spec = pl.BlockSpec((1, cout), lambda i, j: (0, 0))
    o_spec = pl.BlockSpec((1, row_tile, cout), lambda i, j: (i, j, 0))
    cparams = _compiler_params("parallel", "parallel")
    if residual is None:
        return pl.pallas_call(
            _project_kernel, out_shape=out_shape, grid=grid,
            in_specs=[y_spec, g_spec, w_spec, b_spec],
            out_specs=o_spec, compiler_params=cparams,
        )(y_b3, gate, w_scaled, bias)
    r_spec = pl.BlockSpec((1, row_tile, cout), lambda i, j: (i, j, 0))
    return pl.pallas_call(
        _project_res_kernel, out_shape=out_shape, grid=grid,
        in_specs=[y_spec, g_spec, w_spec, b_spec, r_spec],
        out_specs=o_spec, compiler_params=cparams,
    )(y_b3, gate, w_scaled, bias, residual)


# --------------------------------------------------------------------------
# Kernel 3: depthwise ks x ks conv (stride 1) + folded-BN bias + Swish, H-tiled,
# double-buffered halo DMAs, register-blocked tap accumulation, and fused
# per-tile channel sums for the SE global-average pool.
# --------------------------------------------------------------------------
def _depthwise_kernel(x_hbm, w_ref, bias_ref, o_ref, sum_ref, xbuf, sem, *,
                      ks, h_tile, h, w, c, n_ht, row_strip):
    b = pl.program_id(0)
    t = pl.program_id(1)
    pad = ks // 2
    hp = h_tile + 2 * pad
    wp = w + 2 * pad
    dt = xbuf.dtype
    bnd_rows = h_tile + pad                     # rows DMA'd for first/last tile

    # ---------------- halo-slab DMA ----------------
    if n_ht == 1:
        # Single tile per image: nothing to overlap, plain start+wait.
        cslot = 0
        if pad > 0:
            xbuf[0, :, 0:pad, :] = jnp.zeros((hp, pad, c), dt)
            xbuf[0, :, pad + w:, :] = jnp.zeros((hp, pad, c), dt)
            xbuf[0, 0:pad, :, :] = jnp.zeros((pad, wp, c), dt)
            xbuf[0, pad + h_tile:, :, :] = jnp.zeros((pad, wp, c), dt)
        cp = pltpu.make_async_copy(
            x_hbm.at[b], xbuf.at[0, pl.ds(pad, h), pl.ds(pad, w)], sem.at[0])
        cp.start()
        cp.wait()
    else:
        # Manual double-buffering (P4): compute tile t on slot t&1 while tile
        # t+1's slab streams into the other slot.  The t axis is marked
        # "arbitrary" so the per-batch priming below is megacore-safe.
        cslot = t & 1
        nslot = 1 - cslot

        @pl.when(t == 0)
        def _():
            # The scratch persists across grid steps on a core.  Column halos
            # are never written by any DMA, so zero them once per batch (both
            # slots), plus the top halo of slot 0 (tile 0 starts at image row
            # 0).  No DMA into xbuf is in flight here, so the stores are safe.
            if pad > 0:
                for s in range(2):
                    xbuf[s, :, 0:pad, :] = jnp.zeros((hp, pad, c), dt)
                    xbuf[s, :, pad + w:, :] = jnp.zeros((hp, pad, c), dt)
                xbuf[0, 0:pad, :, :] = jnp.zeros((pad, wp, c), dt)
            # Prime the pipeline: tile 0's slab into slot 0 (not overlappable).
            pltpu.make_async_copy(
                x_hbm.at[b, pl.ds(0, bnd_rows)],
                xbuf.at[0, pl.ds(pad, bnd_rows), pl.ds(pad, w)],
                sem.at[0]).start()

        # Wait for tile t's slab (started above for t==0, otherwise prefetched
        # at step t-1).  Boundary tiles copy bnd_rows rows, interior tiles hp
        # rows; the wait's byte count must match the corresponding start.
        is_bnd = jnp.logical_or(t == 0, t == n_ht - 1)

        @pl.when(is_bnd)
        def _():
            pltpu.make_async_copy(
                x_hbm.at[b, pl.ds(0, bnd_rows)],
                xbuf.at[cslot, pl.ds(0, bnd_rows), pl.ds(pad, w)],
                sem.at[cslot]).wait()

        @pl.when(jnp.logical_not(is_bnd))
        def _():
            pltpu.make_async_copy(
                x_hbm.at[b, pl.ds(0, hp)],
                xbuf.at[cslot, pl.ds(0, hp), pl.ds(pad, w)],
                sem.at[cslot]).wait()

        # Prefetch tile t+1's slab into the other slot; it overlaps with the
        # tap compute below.  That slot is idle here (its previous DMA was
        # waited on and its data consumed at step t-1), so the zero-stores and
        # the new start cannot race with an in-flight DMA.
        nt = t + 1

        @pl.when(nt < n_ht - 1)
        def _():
            pltpu.make_async_copy(
                x_hbm.at[b, pl.ds(nt * h_tile - pad, hp)],
                xbuf.at[nslot, pl.ds(0, hp), pl.ds(pad, w)],
                sem.at[nslot]).start()

        @pl.when(nt == n_ht - 1)
        def _():
            if pad > 0:          # last tile: its bottom halo must be zeros
                xbuf[nslot, pl.ds(pad + h_tile, pad)] = jnp.zeros((pad, wp, c), dt)
            pltpu.make_async_copy(
                x_hbm.at[b, pl.ds(nt * h_tile - pad, bnd_rows)],
                xbuf.at[nslot, pl.ds(0, bnd_rows), pl.ds(pad, w)],
                sem.at[nslot]).start()

    # ---------------- ks*ks taps, register-blocked ----------------
    # Rows in strips of `row_strip` (<=8), channels in lane-aligned chunks of
    # <=256, W in chunks sized so the f32 accumulator stays ~<=128 KiB: the
    # accumulator lives in vregs instead of bouncing acc-load/acc-store through
    # VMEM on every tap.  The unaligned dx (sublane) shift is hoisted out of
    # the dy loop: one shifted read per (chunk, dx); dy taps are free
    # leading-dim slices of the in-register slab.
    rs2 = row_strip + 2 * pad
    n_strips = h_tile // row_strip
    c_chunk = 256 if c > 256 else c
    w_chunk = min(w, max(8, (128 * 1024) // (row_strip * c_chunk * 4)))
    if w_chunk < w:
        w_chunk = max(8, (w_chunk // 8) * 8)

    for c0 in range(0, c, c_chunk):                       # static
        cs = min(c_chunk, c - c0)
        wt_c = w_ref[:, c0:c0 + cs]                        # (ks*ks, cs)
        wrows = [wt_c[i].reshape(1, 1, cs) for i in range(ks * ks)]
        bias_c = bias_ref[0, c0:c0 + cs].reshape(1, 1, cs)

        def strip_sums(r0):
            ssum = jnp.zeros((cs,), jnp.float32)
            for w0 in range(0, w, w_chunk):                # static
                ws = min(w_chunk, w - w0)
                acc = jnp.zeros((row_strip, ws, cs), jnp.float32)
                for dx in range(ks):
                    xdx = xbuf[cslot, pl.ds(r0, rs2), pl.ds(w0 + dx, ws),
                               pl.ds(c0, cs)].astype(jnp.float32)
                    for dy in range(ks):
                        acc = acc + xdx[dy:dy + row_strip] * wrows[dy * ks + dx]
                y = acc + bias_c
                y = y * jax.nn.sigmoid(y)                  # Swish
                o_ref[0, pl.ds(r0, row_strip), pl.ds(w0, ws),
                      pl.ds(c0, cs)] = y.astype(o_ref.dtype)
                ssum = ssum + jnp.sum(y, axis=(0, 1))
            return ssum

        if n_strips == 1:
            csum = strip_sums(0)
        else:
            csum = lax.fori_loop(
                0, n_strips,
                lambda si, s: s + strip_sums(
                    pl.multiple_of(si * row_strip, row_strip)),
                jnp.zeros((cs,), jnp.float32), unroll=True)
        # Partial channel sums for the fused SE global-average pool.
        sum_ref[0, 0, 0, c0:c0 + cs] = csum


def depthwise_conv_bn_swish(x_nhwc, w_scaled, bias, *, ks, stride, h_tile_max=32):
    # TODO(synk): stride > 1 depthwise conv not implemented (strided window).
    assert stride == 1, "only stride=1 depthwise conv is implemented"
    b, h, w, c = x_nhwc.shape
    pad = ks // 2
    h_tile = _largest_divisor_leq(h, max(h_tile_max, 1))
    if h_tile < pad:                      # degenerate (e.g. prime H): single tile
        h_tile = h
    n_ht = h // h_tile
    row_strip = _largest_divisor_leq(h_tile, 8)
    n_buf = 1 if n_ht == 1 else 2

    kern = functools.partial(_depthwise_kernel, ks=ks, h_tile=h_tile, h=h,
                             w=w, c=c, n_ht=n_ht, row_strip=row_strip)
    out, sums = pl.pallas_call(
        kern,
        out_shape=(jax.ShapeDtypeStruct((b, h, w, c), x_nhwc.dtype),
                   jax.ShapeDtypeStruct((b, n_ht, 1, c), jnp.float32)),
        grid=(b, n_ht),
        in_specs=[pl.BlockSpec(memory_space=pl.ANY),          # raw HBM input
                  pl.BlockSpec((ks * ks, c), lambda i, j: (0, 0)),
                  pl.BlockSpec((1, c), lambda i, j: (0, 0))],
        out_specs=(pl.BlockSpec((1, h_tile, w, c), lambda i, j: (i, j, 0, 0)),
                   pl.BlockSpec((1, 1, 1, c), lambda i, j: (i, j, 0, 0))),
        scratch_shapes=[pltpu.VMEM((n_buf, h_tile + 2 * pad, w + 2 * pad, c),
                                   x_nhwc.dtype),
                        pltpu.SemaphoreType.DMA((n_buf,))],
        # "arbitrary" on the h-tile axis: the double-buffer priming is done at
        # t==0 of each batch, so the t axis must not be split across cores.
        compiler_params=_compiler_params("parallel", "arbitrary"),
    )(x_nhwc, w_scaled, bias)
    return out, sums


# --------------------------------------------------------------------------
# Parameter init (PyTorch-shaped tensors, deterministic) and BN folding.
# --------------------------------------------------------------------------
def _bn_params(key, c, zero_bn):
    k1, k2 = jax.random.split(key)
    return dict(
        gamma=jnp.zeros((c,), jnp.float32) if zero_bn else jnp.ones((c,), jnp.float32),
        beta=jnp.zeros((c,), jnp.float32),
        mean=0.1 * jax.random.normal(k1, (c,), jnp.float32),
        var=1.0 + 0.2 * jax.random.uniform(k2, (c,), jnp.float32),
    )


def init_mbconv_params(key, ni, nf, ks, s, exp):
    C = ni * exp
    Csq = int(C * 0.25)
    resblock = (s == 1 and ni == nf)
    keys = jax.random.split(key, 10)
    p = {}
    if exp != 1:
        p["conv1_w"] = 0.2 * jax.random.normal(keys[0], (C, ni, 1, 1), jnp.float32)
        p["bn1"] = _bn_params(keys[1], C, False)
    p["conv2_w"] = 0.2 * jax.random.normal(keys[2], (C, 1, ks, ks), jnp.float32)
    p["bn2"] = _bn_params(keys[3], C, False)
    p["se_w1"] = 0.2 * jax.random.normal(keys[4], (Csq, C, 1, 1), jnp.float32)
    p["se_b1"] = 0.1 * jax.random.normal(keys[5], (Csq,), jnp.float32)
    p["se_w2"] = 0.2 * jax.random.normal(keys[6], (C, Csq, 1, 1), jnp.float32)
    p["se_b2"] = 0.1 * jax.random.normal(keys[7], (C,), jnp.float32)
    p["conv3_w"] = 0.2 * jax.random.normal(keys[8], (nf, C, 1, 1), jnp.float32)
    p["bn3"] = _bn_params(keys[9], nf, resblock)
    return p


def _fold_bn(bn):
    scale = bn["gamma"] / jnp.sqrt(bn["var"] + BN_EPS)
    return scale, bn["beta"] - bn["mean"] * scale


# --------------------------------------------------------------------------
# MBConv forward built from the Pallas kernels.
# --------------------------------------------------------------------------
def mbconv_pallas(p, x_nchw, *, ni, nf, ks, s, exp, dw_h_tile_max=32):
    C = ni * exp
    x_nhwc = jnp.transpose(x_nchw, (0, 2, 3, 1))           # NCHW -> NHWC
    b, h, w, _ = x_nhwc.shape
    hw = h * w
    row_tile = _largest_divisor_leq(hw, 1024)               # large row tiles

    x_bf = x_nhwc.astype(jnp.bfloat16)                     # bf16 HBM activations

    if exp != 1:                                           # conv1: 1x1 expand
        s1, b1 = _fold_bn(p["bn1"])
        w1 = (p["conv1_w"][:, :, 0, 0].T * s1[None, :]).astype(jnp.bfloat16)
        y = expand_conv_bn_swish(x_bf.reshape(b, hw, ni), w1,
                                 b1.reshape(1, C).astype(jnp.float32),
                                 row_tile=row_tile)
        y = y.reshape(b, h, w, C)
    else:
        y = x_bf

    # conv2: depthwise ks x ks (BN scale folded into weights) + fused SE pool sums
    s2, b2 = _fold_bn(p["bn2"])
    wdw = jnp.transpose(p["conv2_w"][:, 0, :, :], (1, 2, 0)).reshape(ks * ks, C)
    wdw = (wdw * s2[None, :]).astype(jnp.float32)
    y, sums = depthwise_conv_bn_swish(
        y, wdw, b2.reshape(1, C).astype(jnp.float32),
        ks=ks, stride=s, h_tile_max=dw_h_tile_max)

    # SE gate: tiny (B, C) math in plain JAX; pooled sums come from the
    # depthwise kernel so the expanded tensor is never re-read from HBM.
    z = jnp.sum(sums, axis=(1, 2)) / float(hw)             # (B, C)
    hse = z @ p["se_w1"][:, :, 0, 0].T + p["se_b1"]
    hse = hse * jax.nn.sigmoid(hse)                        # Swish
    gate = jax.nn.sigmoid(hse @ p["se_w2"][:, :, 0, 0].T + p["se_b2"])  # (B, C)
    gate = gate.reshape(b, 1, C).astype(y.dtype)           # bf16 gate, no upcast

    # conv3: 1x1 project with SE gating fused in, optional fused f32 residual.
    s3, b3 = _fold_bn(p["bn3"])
    w3 = (p["conv3_w"][:, :, 0, 0].T * s3[None, :]).astype(jnp.bfloat16)
    resblock = (s == 1 and ni == nf)
    residual = x_nhwc.reshape(b, hw, nf) if resblock else None   # f32 skip path
    out = project_conv_bn(y.reshape(b, hw, C), gate, w3,
                          b3.reshape(1, nf).astype(jnp.float32),
                          row_tile=row_tile, residual=residual)
    out = out.reshape(b, h, w, nf)
    return jnp.transpose(out, (0, 3, 1, 2))                # NHWC -> NCHW


# --------------------------------------------------------------------------
# Pure-JAX reference (mirrors the PyTorch module in NCHW, eval-mode BN).
# --------------------------------------------------------------------------
def _conv2d_nchw(x, w, stride=1, padding=0, groups=1, bias=None):
    out = jax.lax.conv_general_dilated(
        x, w, (stride, stride), ((padding, padding), (padding, padding)),
        dimension_numbers=("NCHW", "OIHW", "NCHW"),
        feature_group_count=groups, precision=jax.lax.Precision.HIGHEST)
    if bias is not None:
        out = out + bias.reshape(1, -1, 1, 1)
    return out


def _bn_eval(x, bn):
    scale = bn["gamma"] / jnp.sqrt(bn["var"] + BN_EPS)
    bias = bn["beta"] - bn["mean"] * scale
    return x * scale.reshape(1, -1, 1, 1) + bias.reshape(1, -1, 1, 1)


def _swish(x):
    return x * jax.nn.sigmoid(x)


def mbconv_reference(p, x, *, ni, nf, ks, s, exp):
    C = ni * exp
    y = x
    if exp != 1:
        y = _swish(_bn_eval(_conv2d_nchw(y, p["conv1_w"]), p["bn1"]))
    y = _swish(_bn_eval(_conv2d_nchw(y, p["conv2_w"], stride=s,
                                     padding=ks // 2, groups=C), p["bn2"]))
    z = jnp.mean(y, axis=(2, 3), keepdims=True)
    z = _swish(_conv2d_nchw(z, p["se_w1"], bias=p["se_b1"]))
    z = jax.nn.sigmoid(_conv2d_nchw(z, p["se_w2"], bias=p["se_b2"]))
    y = y * z
    y = _bn_eval(_conv2d_nchw(y, p["conv3_w"]), p["bn3"])
    if s == 1 and ni == nf:
        y = y + x
    return y


# --------------------------------------------------------------------------
if __name__ == "__main__":
    key = jax.random.PRNGKey(0)
    # (config, dw_h_tile_max).  dw_h_tile_max=4 on a 16-row map exercises the
    # first / interior / last halo-tile paths and the double-buffered DMA;
    # dw_h_tile_max=16 exercises the single-tile path.  Real feature maps use
    # the default (32) or larger tiles.
    cases = [
        (dict(ni=4, nf=8, ks=3, s=1, exp=4), 4),   # expansion branch, no residual
        (dict(ni=4, nf=4, ks=3, s=1, exp=1), 4),   # exp == 1 branch, residual path
        (dict(ni=4, nf=8, ks=5, s=1, exp=2), 4),   # larger depthwise halo (pad=2)
        (dict(ni=4, nf=8, ks=3, s=1, exp=4), 16),  # single-tile depthwise path
    ]
    for cfg, dw_tile in cases:
        key, kx, kp = jax.random.split(key, 3)
        x = jax.random.normal(kx, (2, cfg["ni"], 16, 16), jnp.float32)
        params = init_mbconv_params(kp, **cfg)

        out = mbconv_pallas(params, x, dw_h_tile_max=dw_tile, **cfg)
        out = jax.block_until_ready(out)

        ref = mbconv_reference(params, x, **cfg)
        assert out.shape == ref.shape, (out.shape, ref.shape)
        err = jnp.max(jnp.abs(out - ref))
        # bf16 MXU inputs / bf16 HBM activations -> tolerance looser than pure-f32.
        assert jnp.allclose(out, ref, atol=2e-2, rtol=2e-2), f"mismatch {err}"

    print("KERNEL_OK")
</pallas_src>

<mosaic_0001>
module attributes {stable_mosaic.version = 11 : i64} {
  func.func @_expand_kernel(%arg0: i32, %arg1: i32, %arg2: memref<1x256x4xbf16, #tpu.memory_space<vmem>>, %arg3: memref<4x16xbf16, #tpu.memory_space<vmem>>, %arg4: memref<1x16xf32, #tpu.memory_space<vmem>>, %arg5: memref<1x256x16xbf16, #tpu.memory_space<vmem>>) attributes {dimension_semantics = [#tpu.dimension_semantics<parallel>, #tpu.dimension_semantics<parallel>], iteration_bounds = array<i64: 2, 1>, scalar_prefetch = 0 : i64, scratch_operands = 0 : i64, tpu.core_type = #tpu.core_type<tc>, window_params = [{transform_indices = @transform_0, window_bounds = array<i64: 1, 256, 4>}, {pipeline_mode = #tpu.pipeline_mode<synchronous>, transform_indices = @transform_1, window_bounds = array<i64: 4, 16>}, {pipeline_mode = #tpu.pipeline_mode<synchronous>, transform_indices = @transform_2, window_bounds = array<i64: 1, 16>}, {transform_indices = @transform_3, window_bounds = array<i64: 1, 256, 16>}]} {
    %c0 = arith.constant 0 : index
    %c0_0 = arith.constant 0 : index
    %c0_1 = arith.constant 0 : index
    %0 = vector.load %arg2[%c0, %c0_0, %c0_1] : memref<1x256x4xbf16, #tpu.memory_space<vmem>>, vector<1x256x4xbf16>
    %1 = vector.shape_cast %0 : vector<1x256x4xbf16> to vector<256x4xbf16>
    %c0_2 = arith.constant 0 : index
    %c0_3 = arith.constant 0 : index
    %2 = vector.load %arg3[%c0_2, %c0_3] : memref<4x16xbf16, #tpu.memory_space<vmem>>, vector<4x16xbf16>
    %cst = arith.constant dense<0.000000e+00> : vector<256x16xf32>
    %3 = tpu.matmul %1, %2, %cst {dimension_numbers = #tpu.dot_dimension_numbers<[1], [0], [0], [1], [0, 0, 1, 1], [], []>} : vector<256x4xbf16>, vector<4x16xbf16>, vector<256x16xf32> -> vector<256x16xf32>
    %c0_4 = arith.constant 0 : index
    %c0_5 = arith.constant 0 : index
    %4 = vector.load %arg4[%c0_4, %c0_5] : memref<1x16xf32, #tpu.memory_space<vmem>>, vector<1x16xf32>
    %5 = vector.broadcast %4 : vector<1x16xf32> to vector<256x16xf32>
    %6 = arith.addf %3, %5 : vector<256x16xf32>
    %7 = arith.negf %6 : vector<256x16xf32>
    %8 = math.exp %7 : vector<256x16xf32>
    %cst_6 = arith.constant 1.000000e+00 : f32
    %9 = vector.broadcast %cst_6 : f32 to vector<256x16xf32>
    %10 = arith.addf %9, %8 : vector<256x16xf32>
    %11 = arith.divf %9, %10 : vector<256x16xf32>
    %12 = arith.mulf %6, %11 : vector<256x16xf32>
    %13 = arith.truncf %12 : vector<256x16xf32> to vector<256x16xbf16>
    %c0_7 = arith.constant 0 : index
    %c0_8 = arith.constant 0 : index
    %c0_9 = arith.constant 0 : index
    %14 = vector.load %arg5[%c0_7, %c0_8, %c0_9] : memref<1x256x16xbf16, #tpu.memory_space<vmem>>, vector<1x256x16xbf16>
    %15 = vector.shape_cast %14 : vector<1x256x16xbf16> to vector<256x16xbf16>
    %16 = vector.shape_cast %13 : vector<256x16xbf16> to vector<1x256x16xbf16>
    tpu.vector_store %arg5[%c0_7, %c0_8, %c0_9], %16 {strides = array<i32>} : memref<1x256x16xbf16, #tpu.memory_space<vmem>>, vector<1x256x16xbf16>,
    return
  }
  func.func @transform_0(%arg0: i32, %arg1: i32) -> (i32, i32, i32) {
    %c0_i32 = arith.constant 0 : i32
    %c0_i32_0 = arith.constant 0 : i32
    return %arg0, %arg1, %c0_i32 : i32, i32, i32
  }
  func.func @transform_1(%arg0: i32, %arg1: i32) -> (i32, i32) {
    %c0_i32 = arith.constant 0 : i32
    %c0_i32_0 = arith.constant 0 : i32
    %c0_i32_1 = arith.constant 0 : i32
    return %c0_i32, %c0_i32_0 : i32, i32
  }
  func.func @transform_2(%arg0: i32, %arg1: i32) -> (i32, i32) {
    %c0_i32 = arith.constant 0 : i32
    %c0_i32_0 = arith.constant 0 : i32
    %c0_i32_1 = arith.constant 0 : i32
    return %c0_i32, %c0_i32_0 : i32, i32
  }
  func.func @transform_3(%arg0: i32, %arg1: i32) -> (i32, i32, i32) {
    %c0_i32 = arith.constant 0 : i32
    %c0_i32_0 = arith.constant 0 : i32
    return %arg0, %arg1, %c0_i32 : i32, i32, i32
  }
}

</mosaic_0001>

<bundles_post_ra>
// kernel: tpu_custom_call.1
= control target key start
LH: loop header
LB: loop body
LE: loop exit
PB: predicated region body
PF: predicated region fallthrough
CT: control target
= control target key end

     0   :  { %s1604_s12 = smov 0   ;;  %s1606_s13 = smov 0   ;;  %s2308_s0 = inlined_call_operand.vmem [shape: bf16[2,256,4], index: 0, kind: input, shape index: {}]   ;;  %s2309_s1 = inlined_call_operand.vmem [shape: bf16[4,16], index: 1, kind: input, shape index: {}]   ;;  %s2310_s2 = inlined_call_operand.vmem [shape: f32[1,16], index: 2, kind: input, shape index: {}]   ;;  %s2311_s3 = inlined_call_operand.vmem [shape: bf16[2,256,16], index: 3, kind: output, shape index: {}]  }
   0x1   :  { %s1608_s14 = smov 0  }
   0x2 LB: > { %s25_s15 = sadd.s32 1, %s1578_s13  ;;  %p1266_p0 = scmp.ge.s32.totalorder %s1582_s14, 1  ;;  %s1582_s14 = sphi %s1608_s14, %s13_s14   ;;  %s1578_s13 = sphi %s1606_s13, %s2355_s13   ;;  %s1574_s12 = sphi %s1604_s12, %s2354_s12  }
   0x3   : > { %p27_p1 = scmp.ge.s32.totalorder %s25_s15, 2  ;;  %p158_p2 = scmp.lt.s32.totalorder %s1582_s14, 3 }
   0x5   : > { %s2357_s15 = smov (%p27_p1, %s25_s15), 0  ;;  %p159_p3 = pnand %p1266_p0, %p158_p2 }
   0x6   : > { %p191_p4 = scmp.lt.s32.totalorder (!%p159_p3), %s1574_s12, 1 }
   0x7   : > { %162 = sbr.rel (%p159_p3) target bundleno = 316 (0x13c), region = 32 }
   0xc   : > { %v243_v0 = vld [vmem:[%s2309_s1] sm:$0x3]  ;;  %vm377_vm0 = vcmask 1041408   ;;  %s2359_s12 = smov (!%p191_p4, %s1574_s12), 1  ;;  %vm328_vm1 = vcmask 31744   ;;  %vm1142_vm7 = vcmask 125952  }
   0xd   : > { %v379_v1 = vsel %vm377_vm0, %v243_v0, 0  ;;  %s1385_s18 = sshll.u32 %s2359_s12, 7  ;;  %v1652_v18 = vld [vmem:[%s2310_s2] ss:$0 sm:$0xff] }
   0xe   : > { %388 = vmatpush.bf16.msra.mxu0 %v379_v1  ;;  %1403 = vmatpush.bf16.msra.mxu1 %v379_v1  ;;  %s198_s21 = scalar_lea.vmem %s2308_s0, %s1385_s18  ;;  %s1768_s26 = scalar_lea.vmem %s2311_s3, %s1385_s18 }
   0xf   : > { %1404 = vmatpush.bf16.msra.mxu2 %v379_v1  ;;  %1405 = vmatpush.bf16.msra.mxu3 %v379_v1  ;;  %v1387_v2 = vld [vmem:[%s198_s21] sm:$0xff]  ;;  %v1388_v6 = vld [vmem:[%s198_s21 + $0x8] sm:$0xff]  ;;  %v1389_v10 = vld [vmem:[%s198_s21 + $0x10] sm:$0xff] }
  0x10   : > { %v1391_v3 = vld [vmem:[%s198_s21 + $0x20] sm:$0xff]  ;;  %v1392_v7 = vld [vmem:[%s198_s21 + $0x28] sm:$0xff]  ;;  %v1393_v11 = vld [vmem:[%s198_s21 + $0x30] sm:$0xff] }
  0x11   : > { %v1395_v4 = vld [vmem:[%s198_s21 + $0x40] sm:$0xff]  ;;  %1335 = vmatmul.msk.bf16.vlgmr.msra.gmra.mxu0 %vm328_vm1, %v1387_v2  ;;  %1339 = vmatmul.msk.bf16.vlgmr.msra.gmra.mxu1 %vm328_vm1, %v1391_v3  ;;  %v1396_v8 = vld [vmem:[%s198_s21 + $0x48] sm:$0xff]  ;;  %v1397_v12 = vld [vmem:[%s198_s21 + $0x50] sm:$0xff] }
  0x12   : > { %v1399_v5 = vld [vmem:[%s198_s21 + $0x60] sm:$0xff]  ;;  %1343 = vmatmul.msk.bf16.vlgmr.msra.gmra.mxu2 %vm328_vm1, %v1395_v4  ;;  %v1400_v9 = vld [vmem:[%s198_s21 + $0x68] sm:$0xff]  ;;  %v1401_v13 = vld [vmem:[%s198_s21 + $0x70] sm:$0xff] }
  0x13   : > { %1347 = vmatmul.msk.bf16.vlgmr.msra.gmra.mxu3 %vm328_vm1, %v1399_v5  ;;  %v1390_v14 = vld [vmem:[%s198_s21 + $0x18] sm:$0xff] }
  0x14   : > { %v1394_v15 = vld [vmem:[%s198_s21 + $0x38] sm:$0xff] }
  0x15   : > { %v1398_v16 = vld [vmem:[%s198_s21 + $0x58] sm:$0xff] }
  0x16   : > { %v1402_v17 = vld [vmem:[%s198_s21 + $0x78] sm:$0xff] }
  0x21   : > { %1336 = vmatmul.msk.bf16.gmra.mxu0 %vm328_vm1, %v1388_v6  ;;  %1340 = vmatmul.msk.bf16.gmra.mxu1 %vm328_vm1, %v1392_v7 }
  0x22   : > { %1344 = vmatmul.msk.bf16.gmra.mxu2 %vm328_vm1, %v1396_v8 }
  0x23   : > { %1348 = vmatmul.msk.bf16.gmra.mxu3 %vm328_vm1, %v1400_v9 }
  0x31   : > { %1337 = vmatmul.msk.bf16.gmra.mxu0 %vm328_vm1, %v1389_v10  ;;  %1341 = vmatmul.msk.bf16.gmra.mxu1 %vm328_vm1, %v1393_v11 }
  0x32   : > { %1345 = vmatmul.msk.bf16.gmra.mxu2 %vm328_vm1, %v1397_v12 }
  0x33   : > { %1349 = vmatmul.msk.bf16.gmra.mxu3 %vm328_vm1, %v1401_v13 }
  0x41   : > { %1338 = vmatmul.msk.bf16.gmra.mxu0 %vm328_vm1, %v1390_v14  ;;  %1342 = vmatmul.msk.bf16.gmra.mxu1 %vm328_vm1, %v1394_v15 }
  0x42   : > { %1346 = vmatmul.msk.bf16.gmra.mxu2 %vm328_vm1, %v1398_v16 }
  0x43   : > { %1350 = vmatmul.msk.bf16.gmra.mxu3 %vm328_vm1, %v1402_v17 }
  0x8e   : > { %v390_v19 = vpop.f32.mrf.mxu0  ;;  %v410_v20 = vpop.f32.mrf.mxu1 }
  0x8f   : > { %v1655_v21 = vadd.f32 %v1652_v18, %v390_v19  ;;  %v1658_v22 = vadd.f32 %v1652_v18, %v410_v20 }
  0x91   : > { %v1351_v23 = vmul.f32 -1.442695, %v1655_v21  ;;  %v1359_v24 = vmul.f32 -1.442695, %v1658_v22 }
  0x93   : > { %1431 = vpow2.f32 %v1351_v23 }
  0x94   : > { %1433 = vpow2.f32 %v1359_v24 }
  0x95   : > { %v430_v25 = vpop.f32.mrf.mxu2 }
  0x96   : > { %v450_v26 = vpop.f32.mrf.mxu3  ;;  %v1663_v27 = vadd.f32 %v1652_v18, %v430_v25  ;;  %v392_v29 = vpop.f32.mrf.mxu0 }
  0x97   : > { %v1666_v28 = vadd.f32 %v1652_v18, %v450_v26  ;;  %v412_v30 = vpop.f32.mrf.mxu1  ;;  %v1669_v31 = vadd.f32 %v1652_v18, %v392_v29 }
  0x98   : > { %v1672_v32 = vadd.f32 %v1652_v18, %v412_v30  ;;  %v1367_v33 = vmul.f32 -1.442695, %v1663_v27 }
  0x99   : > { %v1375_v34 = vmul.f32 -1.442695, %v1666_v28  ;;  %v1432_v35 = vpop.eup %1431  ;;  %v1352_v38 = vmul.f32 -1.442695, %v1669_v31 }
  0x9a   : > { %v1434_v36 = vpop.eup %1433  ;;  %v1676_v37 = vadd.f32 1.0, %v1432_v35  ;;  %1435 = vpow2.f32 %v1367_v33  ;;  %v1360_v40 = vmul.f32 -1.442695, %v1672_v32 }
  0x9b   : > { %v1679_v39 = vadd.f32 1.0, %v1434_v36  ;;  %1437 = vpow2.f32 %v1375_v34 }
  0x9c   : > { %1439 = vrcp.f32 %v1676_v37  ;;  %v607_v45 = vand.u32 2147483647, %v1676_v37  ;;  %v609_v46 = vand.u32 2147483648, %v1676_v37  ;;  %vm603_vm2 = vweird.f32 %v1676_v37 }
  0x9d   : > { %1441 = vrcp.f32 %v1679_v39  ;;  %v432_v41 = vpop.f32.mrf.mxu2  ;;  %v727_v49 = vand.u32 2147483647, %v1679_v39  ;;  %v729_v53 = vand.u32 2147483648, %v1679_v39  ;;  %vm723_vm3 = vweird.f32 %v1679_v39 }
  0x9e   : > { %v452_v42 = vpop.f32.mrf.mxu3  ;;  %1443 = vpow2.f32 %v1352_v38  ;;  %v1685_v43 = vadd.f32 %v1652_v18, %v432_v41  ;;  %v395_v44 = vpop.f32.mrf.mxu0  ;;  %vm1708_vm4 = vcmp.eq.f32.partialorder %v607_v45, 8.507059e+37  ;;  %v610_v62 = vor.u32 1.1754944e-38, %v609_v46 }
  0x9f   : > { %1445 = vpow2.f32 %v1360_v40  ;;  %v415_v47 = vpop.f32.mrf.mxu1  ;;  %v1692_v51 = vadd.f32 %v1652_v18, %v452_v42  ;;  %v1698_v55 = vadd.f32 %v1652_v18, %v395_v44  ;;  %vm1714_vm5 = vcmp.eq.f32.partialorder %v727_v49, 8.507059e+37 }
  0xa0   : > { %v1436_v48 = vpop.eup %1435  ;;  %v1368_v50 = vmul.f32 -1.442695, %v1685_v43  ;;  %v1705_v58 = vadd.f32 %v1652_v18, %v415_v47  ;;  %v730_v5 = vor.u32 1.1754944e-38, %v729_v53 }
  0xa1   : > { %v1438_v52 = vpop.eup %1437  ;;  %v1695_v54 = vadd.f32 1.0, %v1436_v48  ;;  %v1376_v2 = vmul.f32 -1.442695, %v1692_v51  ;;  %v1721_v6 = vmul.f32 -1.442695, %v1698_v55 }
  0xa2   : > { %v1440_v56 = vpop.eup %1439  ;;  %v1702_v57 = vadd.f32 1.0, %v1438_v52  ;;  %v1725_v9 = vmul.f32 -1.442695, %v1705_v58 }
  0xa3   : > { %v1442_v59 = vpop.eup %1441  ;;  %v599_v60 = vmul.f32 %v1440_v56, %v1676_v37  ;;  %1447 = vrcp.f32 %v1695_v54  ;;  %vm604_vm6 = vweird.f32 %v1440_v56  ;;  %v847_v8 = vand.u32 2147483647, %v1695_v54 }
  0xa4   : > { %v1444_v63 = vpop.eup %1443  ;;  %v719_v0 = vmul.f32 %v1442_v59, %v1679_v39  ;;  %1449 = vpow2.f32 %v1368_v50  ;;  %v849_v11 = vand.u32 2147483648, %v1695_v54  ;;  %vm724_vm8 = vweird.f32 %v1442_v59  ;;  %vm605_vm10 = vmor %vm603_vm2, %vm604_vm6 }
  0xa5   : > { %v1446_v3 = vpop.eup %1445  ;;  %v600_v4 = vsub.f32 1.0, %v599_v60  ;;  %1451 = vrcp.f32 %v1702_v57  ;;  %v1728_v12 = vadd.f32 1.0, %v1444_v63  ;;  %v967_v15 = vand.u32 2147483647, %v1702_v57  ;;  %v435_v26 = vpop.f32.mrf.mxu2  ;;  %vm725_vm13 = vmor %vm723_vm3, %vm724_vm8 }
  0xa6   : > { %v720_v7 = vsub.f32 1.0, %v719_v0  ;;  %v1730_v13 = vadd.f32 1.0, %v1446_v3  ;;  %1453 = vpow2.f32 %v1376_v2  ;;  %vm843_vm9 = vweird.f32 %v1695_v54 }
  0xa7   : > { %v601_v10 = vmul.f32 %v1440_v56, %v600_v4  ;;  %v969_v19 = vand.u32 2147483648, %v1702_v57  ;;  %1455 = vrcp.f32 %v1728_v12  ;;  %vm1740_vm11 = vcmp.eq.f32.partialorder %v847_v8, 8.507059e+37 }
  0xa8   : > { %v721_v14 = vmul.f32 %v1442_v59, %v720_v7  ;;  %vm963_vm12 = vweird.f32 %v1702_v57  ;;  %v850_v33 = vor.u32 1.1754944e-38, %v849_v11  ;;  %v622_v34 = vand.u32 2147483647, %v1728_v12 }
  0xa9   : > { %v1448_v16 = vpop.eup %1447  ;;  %v602_v17 = vadd.f32 %v1440_v56, %v601_v10  ;;  %1457 = vrcp.f32 %v1730_v13  ;;  %vm1753_vm14 = vcmp.eq.f32.partialorder %v967_v15, 8.507059e+37  ;;  %v970_v42 = vor.u32 1.1754944e-38, %v969_v19 }
  0xaa   : > { %v1450_v20 = vpop.eup %1449  ;;  %v722_v23 = vadd.f32 %v1442_v59, %v721_v14  ;;  %v839_v24 = vmul.f32 %v1448_v16, %v1695_v54  ;;  %v1761_v44 = vadd.f32 %v1652_v18, %v435_v26  ;;  %vm844_vm15 = vweird.f32 %v1448_v16 }
  0xab   : > { %v1452_v29 = vpop.eup %1451  ;;  %v606_v30 = vsel %vm605_vm10, %v1440_v56, %v602_v17  ;;  %vm618_vm0 = vweird.f32 %v1728_v12  ;;  %v624_v50 = vand.u32 2147483648, %v1728_v12  ;;  %v1773_v52 = vadd.f32 1.0, %v1450_v20  ;;  %vm845_vm3 = vmor %vm843_vm9, %vm844_vm15 }
  0xac   : > { %v611_v35 = vsel %vm1708_vm4, %v610_v62, %v606_v30  ;;  %v726_v36 = vsel %vm725_vm13, %v1442_v59, %v722_v23  ;;  %v840_v37 = vsub.f32 1.0, %v839_v24  ;;  %v959_v38 = vmul.f32 %v1452_v29, %v1702_v57  ;;  %v1454_v45 = vpop.eup %1453  ;;  %v455_v30 = vpop.f32.mrf.mxu3 }
  0xad   : > { %v1078_v41 = vmul.f32 %v611_v35, %v1655_v21  ;;  %v731_v39 = vsel %vm1714_vm5, %v730_v5, %v726_v36  ;;  %v1456_v48 = vpop.eup %1455  ;;  %vm964_vm1 = vweird.f32 %v1452_v29  ;;  %vm1776_vm2 = vcmp.eq.f32.partialorder %v622_v34, 8.507059e+37 }
  0xae   : > { %v1086_v46 = vmul.f32 %v731_v39, %v1658_v22  ;;  %v841_v47 = vmul.f32 %v1448_v16, %v840_v37  ;;  %v960_v21 = vsub.f32 1.0, %v959_v38  ;;  %v614_v60 = vmul.f32 %v1456_v48, %v1728_v12  ;;  %vm965_vm5 = vmor %vm963_vm12, %vm964_vm1  ;;  %v397_v38 = vpop.f32.mrf.mxu0 }
  0xaf   : > { %v1110_v49 = vpack.c.bf16 %v1078_v41, %v1078_v41  ;;  %v1458_v61 = vpop.eup %1457  ;;  %vm738_vm4 = vweird.f32 %v1730_v13  ;;  %v742_v62 = vand.u32 2147483647, %v1730_v13  ;;  %1459 = vrcp.f32 %v1773_v52 }
  0xb0   : > { %v1118_v53 = vpack.c.bf16 %v1086_v46, %v1086_v46  ;;  %v842_v56 = vadd.f32 %v1448_v16, %v841_v47  ;;  %v961_v59 = vmul.f32 %v1452_v29, %v960_v21  ;;  %v1788_v63 = vadd.f32 1.0, %v1454_v45 }
  0xb1   : > { %1143 = vst.msk [vmem:[%s1768_s26] sm:$0xf] %vm1142_vm7, %v1110_v49  ;;  %v615_v2 = vsub.f32 1.0, %v614_v60  ;;  %v734_v3 = vmul.f32 %v1458_v61, %v1730_v13  ;;  %vm619_vm6 = vweird.f32 %v1456_v48  ;;  %vm739_vm8 = vweird.f32 %v1458_v61 }
  0xb2   : > { %1151 = vst.msk [vmem:[%s1768_s26 + $0x20] sm:$0xf] %vm1142_vm7, %v1118_v53  ;;  %v846_v0 = vsel %vm845_vm3, %v1448_v16, %v842_v56  ;;  %v962_v1 = vadd.f32 %v1452_v29, %v961_v59  ;;  %v744_v54 = vand.u32 2147483648, %v1730_v13  ;;  %v862_v14 = vand.u32 2147483647, %v1773_v52  ;;  %vm620_vm9 = vmor %vm618_vm0, %vm619_vm6 }
  0xb3   : > { %v851_v4 = vsel %vm1740_vm11, %v850_v33, %v846_v0  ;;  %v616_v8 = vmul.f32 %v1456_v48, %v615_v2  ;;  %v735_v10 = vsub.f32 1.0, %v734_v3  ;;  %v864_v15 = vand.u32 2147483648, %v1773_v52  ;;  %vm740_vm12 = vmor %vm738_vm4, %vm739_vm8 }
  0xb4   : > { %v1094_v5 = vmul.f32 %v851_v4, %v1663_v27  ;;  %v966_v7 = vsel %vm965_vm5, %v1452_v29, %v962_v1  ;;  %1461 = vrcp.f32 %v1788_v63  ;;  %v625_v27 = vor.u32 1.1754944e-38, %v624_v50 }
  0xb5   : > { %v971_v11 = vsel %vm1753_vm14, %v970_v42, %v966_v7  ;;  %v617_v17 = vadd.f32 %v1456_v48, %v616_v8  ;;  %v736_v19 = vmul.f32 %v1458_v61, %v735_v10  ;;  %v1460_v20 = vpop.eup %1459  ;;  %vm1809_vm10 = vcmp.eq.f32.partialorder %v742_v62, 8.507059e+37  ;;  %v417_v42 = vpop.f32.mrf.mxu1 }
  0xb6   : > { %v1126_v57 = vpack.c.bf16 %v1094_v5, %v1094_v5  ;;  %v1102_v16 = vmul.f32 %v971_v11, %v1666_v28  ;;  %v745_v24 = vor.u32 1.1754944e-38, %v744_v54  ;;  %vm858_vm11 = vweird.f32 %v1773_v52  ;;  %v457_v5 = vpop.f32.mrf.mxu3 }
  0xb7   : > { %v621_v28 = vsel %vm620_vm9, %v1456_v48, %v617_v17  ;;  %v737_v26 = vadd.f32 %v1458_v61, %v736_v19  ;;  %v854_v29 = vmul.f32 %v1460_v20, %v1773_v52  ;;  %vm859_vm13 = vweird.f32 %v1460_v20 }
  0xb8   : > { %1159 = vst.msk [vmem:[%s1768_s26 + $0x40] sm:$0xf] %vm1142_vm7, %v1126_v57  ;;  %v1134_v25 = vpack.c.bf16 %v1102_v16, %v1102_v16  ;;  %v626_v12 = vsel %vm1776_vm2, %v625_v27, %v621_v28  ;;  %vm1822_vm14 = vcmp.eq.f32.partialorder %v862_v14, 8.507059e+37  ;;  %v865_v34 = vor.u32 1.1754944e-38, %v864_v15  ;;  %vm860_vm0 = vmor %vm858_vm11, %vm859_vm13  ;;  %v400_v14 = vpop.f32.mrf.mxu0 }
  0xb9   : > { %v1079_v35 = vmul.f32 %v626_v12, %v1669_v31  ;;  %v741_v36 = vsel %vm740_vm12, %v1458_v61, %v737_v26  ;;  %v855_v37 = vsub.f32 1.0, %v854_v29  ;;  %1463 = vpow2.f32 %v1721_v6 }
  0xba   : > { %1167 = vst.msk [vmem:[%s1768_s26 + $0x60] sm:$0xf] %vm1142_vm7, %v1134_v25  ;;  %v1462_v40 = vpop.eup %1461  ;;  %v746_v13 = vsel %vm1809_vm10, %v745_v24, %v741_v36  ;;  %1465 = vpow2.f32 %v1725_v9  ;;  %v1369_v41 = vmul.f32 -1.442695, %v1761_v44  ;;  %v1835_v39 = vadd.f32 %v1652_v18, %v455_v30 }
  0xbb   : > { %v1111_v45 = vpack.c.bf16 %v1079_v35, %v1079_v35  ;;  %v1087_v31 = vmul.f32 %v746_v13, %v1672_v32  ;;  %v856_v46 = vmul.f32 %v1460_v20, %v855_v37  ;;  %v974_v6 = vmul.f32 %v1462_v40, %v1788_v63  ;;  %v437_v32 = vpop.f32.mrf.mxu2 }
  0xbc   : > { %vm978_vm15 = vweird.f32 %v1788_v63  ;;  %1467 = vpow2.f32 %v1369_v41  ;;  %v1377_v47 = vmul.f32 -1.442695, %v1835_v39  ;;  %v1842_v9 = vadd.f32 %v1652_v18, %v397_v38 }
  0xbd   : > { %1144 = vst.msk [vmem:[%s1768_s26 + $0x4] sm:$0xf] %vm1142_vm7, %v1111_v45  ;;  %v1119_v21 = vpack.c.bf16 %v1087_v31, %v1087_v31  ;;  %v857_v48 = vadd.f32 %v1460_v20, %v856_v46  ;;  %v975_v49 = vsub.f32 1.0, %v974_v6  ;;  %v1847_v50 = vadd.f32 %v1652_v18, %v417_v42 }
  0xbe   : > { %v982_v53 = vand.u32 2147483647, %v1788_v63  ;;  %v984_v56 = vand.u32 2147483648, %v1788_v63  ;;  %1469 = vpow2.f32 %v1377_v47  ;;  %v1354_v59 = vmul.f32 -1.442695, %v1842_v9 }
  0xbf   : > { %v1464_v60 = vpop.eup %1463  ;;  %1152 = vst.msk [vmem:[%s1768_s26 + $0x24] sm:$0xf] %vm1142_vm7, %v1119_v21  ;;  %v861_v22 = vsel %vm860_vm0, %v1460_v20, %v857_v48  ;;  %v976_v61 = vmul.f32 %v1462_v40, %v975_v49  ;;  %vm979_vm1 = vweird.f32 %v1462_v40  ;;  %v1362_v62 = vmul.f32 -1.442695, %v1847_v50 }
  0xc0   : > { %v1466_v0 = vpop.eup %1465  ;;  %v866_v52 = vsel %vm1822_vm14, %v865_v34, %v861_v22  ;;  %v1860_v1 = vadd.f32 1.0, %v1464_v60  ;;  %1471 = vpow2.f32 %v1354_v59  ;;  %v1863_v2 = vadd.f32 %v1652_v18, %v437_v32  ;;  %vm980_vm2 = vmor %vm978_vm15, %vm979_vm1 }
  0xc1   : > { %v1095_v3 = vmul.f32 %v866_v52, %v1685_v43  ;;  %v977_v4 = vadd.f32 %v1462_v40, %v976_v61  ;;  %v1866_v54 = vadd.f32 1.0, %v1466_v0  ;;  %1473 = vpow2.f32 %v1362_v62 }
  0xc2   : > { %v1468_v7 = vpop.eup %1467  ;;  %v985_v8 = vor.u32 1.1754944e-38, %v984_v56  ;;  %1475 = vrcp.f32 %v1860_v1  ;;  %vm983_vm3 = vcmp.eq.f32.partialorder %v982_v53, 8.507059e+37  ;;  %v637_v57 = vand.u32 2147483647, %v1860_v1  ;;  %v460_v56 = vpop.f32.mrf.mxu3 }
  0xc3   : > { %v1127_v10 = vpack.c.bf16 %v1095_v3, %v1095_v3  ;;  %v981_v11 = vsel %vm980_vm2, %v1462_v40, %v977_v4  ;;  %1477 = vrcp.f32 %v1866_v54  ;;  %v1370_v16 = vmul.f32 -1.442695, %v1863_v2 }
  0xc4   : > { %v1470_v43 = vpop.eup %1469  ;;  %v986_v15 = vsel %vm983_vm3, %v985_v8, %v981_v11  ;;  %v1875_v17 = vadd.f32 %v1652_v18, %v457_v5  ;;  %v639_v19 = vand.u32 2147483648, %v1860_v1  ;;  %v1881_v20 = vadd.f32 1.0, %v1468_v7 }
  0xc5   : > { %1160 = vst.msk [vmem:[%s1768_s26 + $0x44] sm:$0xf] %vm1142_vm7, %v1127_v10  ;;  %v1103_v63 = vmul.f32 %v986_v15, %v1692_v51  ;;  %v1883_v27 = vadd.f32 1.0, %v1470_v43  ;;  %v757_v24 = vand.u32 2147483647, %v1866_v54  ;;  %v759_v25 = vand.u32 2147483648, %v1866_v54 }
  0xc6   : > { %v1472_v23 = vpop.eup %1471  ;;  %v1888_v28 = vadd.f32 %v1652_v18, %v400_v14  ;;  %1479 = vrcp.f32 %v1881_v20  ;;  %vm633_vm4 = vweird.f32 %v1860_v1  ;;  %vm753_vm5 = vweird.f32 %v1866_v54 }
  0xc7   : > { %v1474_v26 = vpop.eup %1473  ;;  %v1135_v29 = vpack.c.bf16 %v1103_v63, %v1103_v63  ;;  %1481 = vrcp.f32 %v1883_v27  ;;  %v1378_v30 = vmul.f32 -1.442695, %v1875_v17  ;;  %vm1898_vm6 = vcmp.eq.f32.partialorder %v637_v57, 8.507059e+37 }
  0xc8   : > { %v1476_v51 = vpop.eup %1475  ;;  %v640_v35 = vor.u32 1.1754944e-38, %v639_v19  ;;  %1483 = vpow2.f32 %v1370_v16  ;;  %vm1903_vm8 = vcmp.eq.f32.partialorder %v757_v24, 8.507059e+37  ;;  %v760_v38 = vor.u32 1.1754944e-38, %v759_v25 }
  0xc9   : > { %v1478_v12 = vpop.eup %1477  ;;  %1168 = vst.msk [vmem:[%s1768_s26 + $0x64] sm:$0xf] %vm1142_vm7, %v1135_v29  ;;  %v629_v33 = vmul.f32 %v1476_v51, %v1860_v1  ;;  %v877_v40 = vand.u32 2147483647, %v1881_v20  ;;  %v1909_v13 = vmul.f32 -1.442695, %v1888_v28  ;;  %vm873_vm9 = vweird.f32 %v1881_v20  ;;  %v420_v29 = vpop.f32.mrf.mxu1 }
  0xca   : > { %v749_v36 = vmul.f32 %v1478_v12, %v1866_v54  ;;  %v879_v42 = vand.u32 2147483648, %v1881_v20  ;;  %v997_v45 = vand.u32 2147483647, %v1883_v27  ;;  %v1913_v31 = vadd.f32 1.0, %v1472_v23 }
  0xcb   : > { %v630_v41 = vsub.f32 1.0, %v629_v33  ;;  %v999_v6 = vand.u32 2147483648, %v1883_v27  ;;  %v1917_v47 = vadd.f32 1.0, %v1474_v26  ;;  %1485 = vpow2.f32 %v1378_v30 }
  0xcc   : > { %v750_v46 = vsub.f32 1.0, %v749_v36  ;;  %v1480_v21 = vpop.eup %1479  ;;  %vm634_vm10 = vweird.f32 %v1476_v51  ;;  %vm993_vm11 = vweird.f32 %v1883_v27  ;;  %1487 = vrcp.f32 %v1913_v31 }
  0xcd   : > { %v631_v48 = vmul.f32 %v1476_v51, %v630_v41  ;;  %v1482_v49 = vpop.eup %1481  ;;  %vm754_vm12 = vweird.f32 %v1478_v12  ;;  %v869_v53 = vmul.f32 %v1480_v21, %v1881_v20  ;;  %vm1922_vm13 = vcmp.eq.f32.partialorder %v877_v40, 8.507059e+37  ;;  %vm635_vm15 = vmor %vm633_vm4, %vm634_vm10 }
  0xce   : > { %v751_v32 = vmul.f32 %v1478_v12, %v750_v46  ;;  %v1484_v59 = vpop.eup %1483  ;;  %v880_v22 = vor.u32 1.1754944e-38, %v879_v42  ;;  %v989_v61 = vmul.f32 %v1482_v49, %v1883_v27  ;;  %vm1927_vm14 = vcmp.eq.f32.partialorder %v997_v45, 8.507059e+37  ;;  %vm755_vm0 = vmor %vm753_vm5, %vm754_vm12 }
  0xcf   : > { %v632_v60 = vadd.f32 %v1476_v51, %v631_v48  ;;  %v870_v52 = vsub.f32 1.0, %v869_v53  ;;  %v1000_v3 = vor.u32 1.1754944e-38, %v999_v6  ;;  %1489 = vrcp.f32 %v1917_v47 }
  0xd0   : > { %v752_v0 = vadd.f32 %v1478_v12, %v751_v32  ;;  %vm874_vm1 = vweird.f32 %v1480_v21  ;;  %v990_v5 = vsub.f32 1.0, %v989_v61  ;;  %v652_v7 = vand.u32 2147483647, %v1913_v31 }
  0xd1   : > { %v636_v4 = vsel %vm635_vm15, %v1476_v51, %v632_v60  ;;  %v1486_v8 = vpop.eup %1485  ;;  %v871_v1 = vmul.f32 %v1480_v21, %v870_v52  ;;  %v654_v14 = vand.u32 2147483648, %v1913_v31  ;;  %vm994_vm2 = vweird.f32 %v1482_v49  ;;  %vm875_vm3 = vmor %vm873_vm9, %vm874_vm1  ;;  %v402_v52 = vpop.f32.mrf.mxu0 }
  0xd2   : > { %v641_v10 = vsel %vm1898_vm6, %v640_v35, %v636_v4  ;;  %v756_v11 = vsel %vm755_vm0, %v1478_v12, %v752_v0  ;;  %v1488_v43 = vpop.eup %1487  ;;  %v991_v54 = vmul.f32 %v1482_v49, %v990_v5  ;;  %v772_v23 = vand.u32 2147483647, %v1917_v47  ;;  %vm995_vm4 = vmor %vm993_vm11, %vm994_vm2 }
  0xd3   : > { %v1080_v15 = vmul.f32 %v641_v10, %v1698_v55  ;;  %v761_v57 = vsel %vm1903_vm8, %v760_v38, %v756_v11  ;;  %v872_v63 = vadd.f32 %v1480_v21, %v871_v1  ;;  %v644_v19 = vmul.f32 %v1488_v43, %v1913_v31  ;;  %v440_v38 = vpop.f32.mrf.mxu2 }
  0xd4   : > { %v1088_v16 = vmul.f32 %v761_v57, %v1705_v58  ;;  %v992_v55 = vadd.f32 %v1482_v49, %v991_v54  ;;  %v774_v25 = vand.u32 2147483648, %v1917_v47  ;;  %v1950_v26 = vadd.f32 1.0, %v1484_v59 }
  0xd5   : > { %v1112_v24 = vpack.c.bf16 %v1080_v15, %v1080_v15  ;;  %v1490_v51 = vpop.eup %1489  ;;  %v876_v30 = vsel %vm875_vm3, %v1480_v21, %v872_v63  ;;  %v645_v12 = vsub.f32 1.0, %v644_v19  ;;  %v1954_v33 = vadd.f32 1.0, %v1486_v8 }
  0xd6   : > { %v1120_v58 = vpack.c.bf16 %v1088_v16, %v1088_v16  ;;  %v881_v20 = vsel %vm1922_vm13, %v880_v22, %v876_v30  ;;  %v996_v34 = vsel %vm995_vm4, %v1482_v49, %v992_v55  ;;  %vm649_vm5 = vweird.f32 %v1488_v43 }
  0xd7   : > { %1145 = vst.msk [vmem:[%s1768_s26 + $0x8] sm:$0xf] %vm1142_vm7, %v1112_v24  ;;  %v764_v35 = vmul.f32 %v1490_v51, %v1917_v47  ;;  %v1096_v36 = vmul.f32 %v881_v20, %v1761_v44  ;;  %v1001_v27 = vsel %vm1927_vm14, %v1000_v3, %v996_v34  ;;  %v646_v37 = vmul.f32 %v1488_v43, %v645_v12  ;;  %v422_v3 = vpop.f32.mrf.mxu1 }
  0xd8   : > { %1153 = vst.msk [vmem:[%s1768_s26 + $0x28] sm:$0xf] %vm1142_vm7, %v1120_v58  ;;  %1491 = vrcp.f32 %v1950_v26  ;;  %v1104_v40 = vmul.f32 %v1001_v27, %v1835_v39  ;;  %vm648_vm6 = vweird.f32 %v1913_v31  ;;  %v1970_v42 = vadd.f32 %v1652_v18, %v420_v29 }
  0xd9   : > { %v765_v41 = vsub.f32 1.0, %v764_v35  ;;  %v1128_v45 = vpack.c.bf16 %v1096_v36, %v1096_v36  ;;  %v647_v46 = vadd.f32 %v1488_v43, %v646_v37  ;;  %vm653_vm8 = vcmp.eq.f32.partialorder %v652_v7, 8.507059e+37  ;;  %vm650_vm9 = vmor %vm648_vm6, %vm649_vm5 }
  0xda   : > { %1493 = vrcp.f32 %v1954_v33  ;;  %v1136_v44 = vpack.c.bf16 %v1104_v40, %v1104_v40  ;;  %v655_v6 = vor.u32 1.1754944e-38, %v654_v14  ;;  %vm769_vm10 = vweird.f32 %v1490_v51 }
  0xdb   : > { %v766_v21 = vmul.f32 %v1490_v51, %v765_v41  ;;  %1161 = vst.msk [vmem:[%s1768_s26 + $0x48] sm:$0xf] %vm1142_vm7, %v1128_v45  ;;  %v651_v39 = vsel %vm650_vm9, %v1488_v43, %v647_v46  ;;  %vm768_vm11 = vweird.f32 %v1917_v47  ;;  %vm1977_vm12 = vcmp.eq.f32.partialorder %v772_v23, 8.507059e+37  ;;  %v442_v54 = vpop.f32.mrf.mxu2 }
  0xdc   : > { %v775_v48 = vor.u32 1.1754944e-38, %v774_v25  ;;  %1169 = vst.msk [vmem:[%s1768_s26 + $0x68] sm:$0xf] %vm1142_vm7, %v1136_v44  ;;  %v656_v49 = vsel %vm653_vm8, %v655_v6, %v651_v39  ;;  %vm888_vm13 = vweird.f32 %v1950_v26  ;;  %1495 = vpow2.f32 %v1909_v13  ;;  %vm770_vm14 = vmor %vm768_vm11, %vm769_vm10 }
  0xdd   : > { %v767_v32 = vadd.f32 %v1490_v51, %v766_v21  ;;  %v1363_v53 = vmul.f32 -1.442695, %v1970_v42  ;;  %v1081_v60 = vmul.f32 %v656_v49, %v1842_v9  ;;  %v892_v47 = vand.u32 2147483647, %v1950_v26 }
  0xde   : > { %v1492_v59 = vpop.eup %1491  ;;  %v894_v22 = vand.u32 2147483648, %v1950_v26  ;;  %v1991_v61 = vadd.f32 %v1652_v18, %v440_v38  ;;  %v1012_v13 = vand.u32 2147483647, %v1954_v33  ;;  %v1999_v8 = vadd.f32 %v1652_v18, %v460_v56  ;;  %v462_v38 = vpop.f32.mrf.mxu3 }
  0xdf   : > { %v771_v62 = vsel %vm770_vm14, %v1490_v51, %v767_v32  ;;  %v884_v0 = vmul.f32 %v1492_v59, %v1950_v26  ;;  %1497 = vpow2.f32 %v1363_v53  ;;  %v1113_v9 = vpack.c.bf16 %v1081_v60, %v1081_v60 }
  0xe0   : > { %v1494_v4 = vpop.eup %1493  ;;  %v776_v5 = vsel %vm1977_vm12, %v775_v48, %v771_v62  ;;  %v1371_v7 = vmul.f32 -1.442695, %v1991_v61  ;;  %v1014_v14 = vand.u32 2147483648, %v1954_v33  ;;  %v1379_v43 = vmul.f32 -1.442695, %v1999_v8 }
  0xe1   : > { %v1089_v10 = vmul.f32 %v776_v5, %v1847_v50  ;;  %v885_v11 = vsub.f32 1.0, %v884_v0  ;;  %v1004_v1 = vmul.f32 %v1494_v4, %v1954_v33  ;;  %1146 = vst.msk [vmem:[%s1768_s26 + $0xc] sm:$0xf] %vm1142_vm7, %v1113_v9  ;;  %v2008_v15 = vadd.f32 %v1652_v18, %v402_v52 }
  0xe2   : > { %1499 = vpow2.f32 %v1371_v7  ;;  %v2011_v57 = vadd.f32 %v1652_v18, %v422_v3  ;;  %v1496_v16 = vpop.eup %1495  ;;  %vm889_vm15 = vweird.f32 %v1492_v59  ;;  %vm1009_vm0 = vweird.f32 %v1494_v4 }
  0xe3   : > { %v1121_v50 = vpack.c.bf16 %v1089_v10, %v1089_v10  ;;  %v886_v63 = vmul.f32 %v1492_v59, %v885_v11  ;;  %v1005_v19 = vsub.f32 1.0, %v1004_v1  ;;  %v2013_v23 = vadd.f32 1.0, %v1496_v16  ;;  %vm890_vm1 = vmor %vm888_vm13, %vm889_vm15 }
  0xe4   : > { %1501 = vpow2.f32 %v1379_v43  ;;  %v1356_v24 = vmul.f32 -1.442695, %v2008_v15  ;;  %v1364_v55 = vmul.f32 -1.442695, %v2011_v57  ;;  %v2020_v58 = vadd.f32 %v1652_v18, %v442_v54 }
  0xe5   : > { %v1498_v25 = vpop.eup %1497  ;;  %1154 = vst.msk [vmem:[%s1768_s26 + $0x2c] sm:$0xf] %vm1142_vm7, %v1121_v50  ;;  %v887_v29 = vadd.f32 %v1492_v59, %v886_v63  ;;  %v1006_v51 = vmul.f32 %v1494_v4, %v1005_v19  ;;  %vm893_vm2 = vcmp.eq.f32.partialorder %v892_v47, 8.507059e+37  ;;  %v895_v30 = vor.u32 1.1754944e-38, %v894_v22 }
  0xe6   : > { %vm1008_vm3 = vweird.f32 %v1954_v33  ;;  %1503 = vrcp.f32 %v2013_v23  ;;  %v2026_v34 = vadd.f32 1.0, %v1498_v25  ;;  %vm1013_vm5 = vcmp.eq.f32.partialorder %v1012_v13, 8.507059e+37 }
  0xe7   : > { %v891_v12 = vsel %vm890_vm1, %v1492_v59, %v887_v29  ;;  %v1007_v20 = vadd.f32 %v1494_v4, %v1006_v51  ;;  %1505 = vpow2.f32 %v1356_v24  ;;  %vm1010_vm4 = vmor %vm1008_vm3, %vm1009_vm0  ;;  %v1015_v27 = vor.u32 1.1754944e-38, %v1014_v14 }
  0xe8   : > { %v1500_v35 = vpop.eup %1499  ;;  %v896_v36 = vsel %vm893_vm2, %v895_v30, %v891_v12  ;;  %1507 = vpow2.f32 %v1364_v55  ;;  %v1372_v33 = vmul.f32 -1.442695, %v2020_v58  ;;  %v667_v45 = vand.u32 2147483647, %v2013_v23 }
  0xe9   : > { %v1097_v26 = vmul.f32 %v896_v36, %v1863_v2  ;;  %v1011_v37 = vsel %vm1010_vm4, %v1494_v4, %v1007_v20  ;;  %1509 = vrcp.f32 %v2026_v34  ;;  %v669_v46 = vand.u32 2147483648, %v2013_v23 }
  0xea   : > { %v1502_v40 = vpop.eup %1501  ;;  %v1016_v41 = vsel %vm1013_vm5, %v1015_v27, %v1011_v37  ;;  %v2033_v44 = vadd.f32 1.0, %v1500_v35  ;;  %v787_v31 = vand.u32 2147483647, %v2026_v34  ;;  %v789_v48 = vand.u32 2147483648, %v2026_v34 }
  0xeb   : > { %v1129_v6 = vpack.c.bf16 %v1097_v26, %v1097_v26  ;;  %v1105_v21 = vmul.f32 %v1016_v41, %v1875_v17  ;;  %v2036_v39 = vadd.f32 1.0, %v1502_v40  ;;  %v2042_v49 = vadd.f32 %v1652_v18, %v462_v38 }
  0xec   : > { %v1504_v2 = vpop.eup %1503  ;;  %1511 = vrcp.f32 %v2033_v44  ;;  %vm663_vm6 = vweird.f32 %v2013_v23  ;;  %vm2048_vm8 = vcmp.eq.f32.partialorder %v667_v45, 8.507059e+37  ;;  %v670_v60 = vor.u32 1.1754944e-38, %v669_v46 }
  0xed   : > { %v1506_v32 = vpop.eup %1505  ;;  %1162 = vst.msk [vmem:[%s1768_s26 + $0x4c] sm:$0xf] %vm1142_vm7, %v1129_v6  ;;  %v1137_v53 = vpack.c.bf16 %v1105_v21, %v1105_v21  ;;  %v659_v56 = vmul.f32 %v1504_v2, %v2013_v23  ;;  %1513 = vpow2.f32 %v1372_v33  ;;  %v907_v47 = vand.u32 2147483647, %v2033_v44  ;;  %v405_v21 = vpop.f32.mrf.mxu0 }
  0xee   : > { %v1508_v17 = vpop.eup %1507  ;;  %1515 = vrcp.f32 %v2036_v39  ;;  %vm783_vm9 = vweird.f32 %v2026_v34  ;;  %v909_v62 = vand.u32 2147483648, %v2033_v44  ;;  %v2058_v0 = vadd.f32 1.0, %v1506_v32 }
  0xef   : > { %v1510_v18 = vpop.eup %1509  ;;  %1170 = vst.msk [vmem:[%s1768_s26 + $0x6c] sm:$0xf] %vm1142_vm7, %v1137_v53  ;;  %v660_v22 = vsub.f32 1.0, %v659_v56  ;;  %vm2061_vm10 = vcmp.eq.f32.partialorder %v787_v31, 8.507059e+37  ;;  %v790_v3 = vor.u32 1.1754944e-38, %v789_v48  ;;  %v1029_v4 = vand.u32 2147483648, %v2036_v39 }
  0xf0   : > { %v779_v13 = vmul.f32 %v1510_v18, %v2026_v34  ;;  %vm664_vm11 = vweird.f32 %v1504_v2  ;;  %v1027_v5 = vand.u32 2147483647, %v2036_v39  ;;  %1517 = vrcp.f32 %v2058_v0 }
  0xf1   : > { %v661_v9 = vmul.f32 %v1504_v2, %v660_v22  ;;  %vm903_vm12 = vweird.f32 %v2033_v44  ;;  %v684_v11 = vand.u32 2147483648, %v2058_v0  ;;  %v2070_v1 = vadd.f32 1.0, %v1508_v17  ;;  %vm665_vm0 = vmor %vm663_vm6, %vm664_vm11 }
  0xf2   : > { %v1512_v7 = vpop.eup %1511  ;;  %v780_v10 = vsub.f32 1.0, %v779_v13  ;;  %vm784_vm13 = vweird.f32 %v1510_v18  ;;  %vm2073_vm14 = vcmp.eq.f32.partialorder %v907_v47, 8.507059e+37  ;;  %v910_v50 = vor.u32 1.1754944e-38, %v909_v62  ;;  %v445_v47 = vpop.f32.mrf.mxu2 }
  0xf3   : > { %v1514_v14 = vpop.eup %1513  ;;  %v662_v43 = vadd.f32 %v1504_v2, %v661_v9  ;;  %v899_v54 = vmul.f32 %v1512_v7, %v2033_v44  ;;  %vm1023_vm15 = vweird.f32 %v2036_v39  ;;  %v1030_v24 = vor.u32 1.1754944e-38, %v1029_v4  ;;  %vm785_vm4 = vmor %vm783_vm9, %vm784_vm13 }
  0xf4   : > { %v1516_v63 = vpop.eup %1515  ;;  %v781_v19 = vmul.f32 %v1510_v18, %v780_v10  ;;  %v682_v55 = vand.u32 2147483647, %v2058_v0  ;;  %1519 = vrcp.f32 %v2070_v1  ;;  %vm904_vm1 = vweird.f32 %v1512_v7 }
  0xf5   : > { %v666_v25 = vsel %vm665_vm0, %v1504_v2, %v662_v43  ;;  %v900_v29 = vsub.f32 1.0, %v899_v54  ;;  %v1019_v51 = vmul.f32 %v1516_v63, %v2036_v39  ;;  %vm2084_vm2 = vcmp.eq.f32.partialorder %v1027_v5, 8.507059e+37  ;;  %v425_v2 = vpop.f32.mrf.mxu1  ;;  %v1559_v43 = vld [vmem:[%s2310_s2] ss:$0 sm:$0xff]  ;;  %v407_v30 = vpop.f32.mrf.mxu0 }
  0xf6   : > { %v671_v12 = vsel %vm2048_vm8, %v670_v60, %v666_v25  ;;  %v782_v23 = vadd.f32 %v1510_v18, %v781_v19  ;;  %vm678_vm3 = vweird.f32 %v2058_v0  ;;  %v685_v20 = vor.u32 1.1754944e-38, %v684_v11  ;;  %v1518_v36 = vpop.eup %1517  ;;  %vm905_vm8 = vmor %vm903_vm12, %vm904_vm1 }
  0xf7   : > { %v2091_v35 = vadd.f32 1.0, %v1514_v14  ;;  %v1082_v27 = vmul.f32 %v671_v12, %v1888_v28  ;;  %v901_v26 = vmul.f32 %v1512_v7, %v900_v29  ;;  %v1020_v37 = vsub.f32 1.0, %v1019_v51 }
  0xf8   : > { %vm1024_vm5 = vweird.f32 %v1516_v63  ;;  %v786_v33 = vsel %vm785_vm4, %v1510_v18, %v782_v23  ;;  %v674_v38 = vmul.f32 %v1518_v36, %v2058_v0  ;;  %vm2098_vm6 = vcmp.eq.f32.partialorder %v682_v55, 8.507059e+37 }
  0xf9   : > { %v802_v41 = vand.u32 2147483647, %v2070_v1  ;;  %v804_v45 = vand.u32 2147483648, %v2070_v1  ;;  %v1114_v28 = vpack.c.bf16 %v1082_v27, %v1082_v27  ;;  %v791_v34 = vsel %vm2061_vm10, %v790_v3, %v786_v33  ;;  %vm1025_vm11 = vmor %vm1023_vm15, %vm1024_vm5 }
  0xfa   : > { %v902_v46 = vadd.f32 %v1512_v7, %v901_v26  ;;  %v1021_v6 = vmul.f32 %v1516_v63, %v1020_v37  ;;  %v1520_v31 = vpop.eup %1519  ;;  %v1090_v48 = vmul.f32 %v791_v34, %v1970_v42  ;;  %v675_v32 = vsub.f32 1.0, %v674_v38  ;;  %v447_v40 = vpop.f32.mrf.mxu2 }
  0xfb   : > { %vm798_vm9 = vweird.f32 %v2070_v1  ;;  %1521 = vrcp.f32 %v2091_v35  ;;  %1147 = vst.msk [vmem:[%s1768_s26 + $0x10] sm:$0xf] %vm1142_vm7, %v1114_v28  ;;  %vm679_vm10 = vweird.f32 %v1518_v36  ;;  %v794_v17 = vmul.f32 %v1520_v31, %v2070_v1 }
  0xfc   : > { %v906_v53 = vsel %vm905_vm8, %v1512_v7, %v902_v46  ;;  %v1022_v56 = vadd.f32 %v1516_v63, %v1021_v6  ;;  %v1122_v59 = vpack.c.bf16 %v1090_v48, %v1090_v48  ;;  %v676_v44 = vmul.f32 %v1518_v36, %v675_v32  ;;  %v465_v7 = vpop.f32.mrf.mxu3 }
  0xfd   : > { %v911_v42 = vsel %vm2073_vm14, %v910_v50, %v906_v53  ;;  %vm2120_vm12 = vcmp.eq.f32.partialorder %v802_v41, 8.507059e+37  ;;  %v795_v62 = vsub.f32 1.0, %v794_v17  ;;  %v805_v13 = vor.u32 1.1754944e-38, %v804_v45  ;;  %vm680_vm14 = vmor %vm678_vm3, %vm679_vm10 }
  0xfe   : > { %v1098_v18 = vmul.f32 %v911_v42, %v1991_v61  ;;  %v1026_v22 = vsel %vm1025_vm11, %v1516_v63, %v1022_v56  ;;  %1155 = vst.msk [vmem:[%s1768_s26 + $0x30] sm:$0xf] %vm1142_vm7, %v1122_v59  ;;  %v677_v3 = vadd.f32 %v1518_v36, %v676_v44  ;;  %vm799_vm13 = vweird.f32 %v1520_v31 }
  0xff   : > { %v1031_v52 = vsel %vm2084_vm2, %v1030_v24, %v1026_v22  ;;  %v1380_v39 = vmul.f32 -1.442695, %v2042_v49  ;;  %v796_v61 = vmul.f32 %v1520_v31, %v795_v62  ;;  %v922_v5 = vand.u32 2147483647, %v2091_v35  ;;  %vm800_vm15 = vmor %vm798_vm9, %vm799_vm13 }
 0x100   : > { %v1130_v4 = vpack.c.bf16 %v1098_v18, %v1098_v18  ;;  %v1106_v9 = vmul.f32 %v1031_v52, %v1999_v8  ;;  %v681_v11 = vsel %vm680_vm14, %v1518_v36, %v677_v3  ;;  %v924_v14 = vand.u32 2147483648, %v2091_v35 }
 0x101   : > { %v1522_v10 = vpop.eup %1521  ;;  %1523 = vpow2.f32 %v1380_v39  ;;  %v2139_v54 = vadd.f32 %v1559_v43, %v405_v21  ;;  %v686_v0 = vsel %vm2098_vm6, %v685_v20, %v681_v11  ;;  %v797_v16 = vadd.f32 %v1520_v31, %v796_v61 }
 0x102   : > { %1163 = vst.msk [vmem:[%s1768_s26 + $0x50] sm:$0xf] %vm1142_vm7, %v1130_v4  ;;  %v1138_v8 = vpack.c.bf16 %v1106_v9, %v1106_v9  ;;  %v914_v50 = vmul.f32 %v1522_v10, %v2091_v35  ;;  %v1083_v63 = vmul.f32 %v686_v0, %v2008_v15  ;;  %vm919_vm0 = vweird.f32 %v1522_v10  ;;  %v427_v15 = vpop.f32.mrf.mxu1 }
 0x103   : > { %v1357_v19 = vmul.f32 -1.442695, %v2139_v54  ;;  %v2151_v24 = vadd.f32 %v1559_v43, %v425_v2  ;;  %v801_v55 = vsel %vm800_vm15, %v1520_v31, %v797_v16  ;;  %v2155_v29 = vadd.f32 %v1559_v43, %v445_v47 }
 0x104   : > { %1171 = vst.msk [vmem:[%s1768_s26 + $0x70] sm:$0xf] %vm1142_vm7, %v1138_v8  ;;  %v915_v25 = vsub.f32 1.0, %v914_v50  ;;  %v2157_v51 = vadd.f32 %v1559_v43, %v465_v7  ;;  %v1115_v12 = vpack.c.bf16 %v1083_v63, %v1083_v63  ;;  %v806_v1 = vsel %vm2120_vm12, %v805_v13, %v801_v55  ;;  %v467_v6 = vpop.f32.mrf.mxu3 }
 0x105   : > { %1525 = vpow2.f32 %v1357_v19  ;;  %v1365_v23 = vmul.f32 -1.442695, %v2151_v24  ;;  %v1091_v20 = vmul.f32 %v806_v1, %v2011_v57  ;;  %v1373_v27 = vmul.f32 -1.442695, %v2155_v29 }
 0x106   : > { %v916_v36 = vmul.f32 %v1522_v10, %v915_v25  ;;  %v1381_v26 = vmul.f32 -1.442695, %v2157_v51  ;;  %1148 = vst.msk [vmem:[%s1768_s26 + $0x14] sm:$0xf] %vm1142_vm7, %v1115_v12  ;;  %vm918_vm1 = vweird.f32 %v2091_v35  ;;  %v2168_v33 = vadd.f32 %v1559_v43, %v407_v30 }
 0x107   : > { %v1524_v37 = vpop.eup %1523  ;;  %1527 = vpow2.f32 %v1365_v23  ;;  %v2170_v38 = vadd.f32 %v1559_v43, %v427_v15  ;;  %v1123_v41 = vpack.c.bf16 %v1091_v20, %v1091_v20  ;;  %vm920_vm2 = vmor %vm918_vm1, %vm919_vm0  ;;  %v925_v28 = vor.u32 1.1754944e-38, %v924_v14 }
 0x108   : > { %v917_v45 = vadd.f32 %v1522_v10, %v916_v36  ;;  %v2172_v57 = vadd.f32 1.0, %v1524_v37  ;;  %1529 = vpow2.f32 %v1373_v27  ;;  %v1358_v34 = vmul.f32 -1.442695, %v2168_v33 }
 0x109   : > { %1531 = vpow2.f32 %v1381_v26  ;;  %1156 = vst.msk [vmem:[%s1768_s26 + $0x34] sm:$0xf] %vm1142_vm7, %v1123_v41  ;;  %vm923_vm3 = vcmp.eq.f32.partialorder %v922_v5, 8.507059e+37  ;;  %v2179_v46 = vadd.f32 %v1559_v43, %v447_v40  ;;  %v1366_v32 = vmul.f32 -1.442695, %v2170_v38 }
 0x10a   : > { %v921_v35 = vsel %vm920_vm2, %v1522_v10, %v917_v45  ;;  %1533 = vrcp.f32 %v2172_v57  ;;  %v2185_v56 = vadd.f32 %v1559_v43, %v467_v6  ;;  %v1042_v60 = vand.u32 2147483647, %v2172_v57 }
 0x10b   : > { %v1526_v21 = vpop.eup %1525  ;;  %v926_v2 = vsel %vm923_vm3, %v925_v28, %v921_v35  ;;  %1535 = vpow2.f32 %v1358_v34  ;;  %v1374_v42 = vmul.f32 -1.442695, %v2179_v46  ;;  %vm1038_vm4 = vweird.f32 %v2172_v57 }
 0x10c   : > { %v1099_v31 = vmul.f32 %v926_v2, %v2020_v58  ;;  %v2182_v48 = vadd.f32 1.0, %v1526_v21  ;;  %v1044_v58 = vand.u32 2147483648, %v2172_v57  ;;  %v1382_v52 = vmul.f32 -1.442695, %v2185_v56 }
 0x10d   : > { %v1528_v53 = vpop.eup %1527  ;;  %vm2206_vm5 = vcmp.eq.f32.partialorder %v1042_v60, 8.507059e+37 }
 0x10e   : > { %v1530_v17 = vpop.eup %1529  ;;  %v1131_v59 = vpack.c.bf16 %v1099_v31, %v1099_v31  ;;  %1537 = vrcp.f32 %v2182_v48  ;;  %v2191_v47 = vadd.f32 1.0, %v1528_v53  ;;  %v697_v3 = vand.u32 2147483647, %v2182_v48 }
 0x10f   : > { %v1532_v44 = vpop.eup %1531  ;;  %v2193_v18 = vadd.f32 1.0, %v1530_v17  ;;  %1539 = vpow2.f32 %v1366_v32  ;;  %v699_v39 = vand.u32 2147483648, %v2182_v48  ;;  %v1045_v5 = vor.u32 1.1754944e-38, %v1044_v58 }
 0x110   : > { %v1534_v22 = vpop.eup %1533  ;;  %1164 = vst.msk [vmem:[%s1768_s26 + $0x54] sm:$0xf] %vm1142_vm7, %v1131_v59  ;;  %v2197_v62 = vadd.f32 1.0, %v1532_v44  ;;  %1541 = vrcp.f32 %v2191_v47  ;;  %vm693_vm6 = vweird.f32 %v2182_v48  ;;  %v817_v10 = vand.u32 2147483647, %v2191_v47 }
 0x111   : > { %v1034_v13 = vmul.f32 %v1534_v22, %v2172_v57  ;;  %1543 = vrcp.f32 %v2193_v18  ;;  %v1536_v4 = vpop.eup %1535  ;;  %v819_v11 = vand.u32 2147483648, %v2191_v47  ;;  %vm1039_vm8 = vweird.f32 %v1534_v22 }
 0x112   : > { %1545 = vpow2.f32 %v1374_v42  ;;  %vm2215_vm9 = vcmp.eq.f32.partialorder %v697_v3, 8.507059e+37  ;;  %v700_v16 = vor.u32 1.1754944e-38, %v699_v39  ;;  %vm813_vm10 = vweird.f32 %v2191_v47  ;;  %vm1040_vm12 = vmor %vm1038_vm4, %vm1039_vm8 }
 0x113   : > { %v1035_v9 = vsub.f32 1.0, %v1034_v13  ;;  %1547 = vrcp.f32 %v2197_v62  ;;  %v2220_v50 = vadd.f32 1.0, %v1536_v4  ;;  %vm933_vm11 = vweird.f32 %v2193_v18 }
 0x114   : > { %v1538_v7 = vpop.eup %1537  ;;  %1549 = vpow2.f32 %v1382_v52  ;;  %v937_v25 = vand.u32 2147483647, %v2193_v18  ;;  %vm2227_vm13 = vcmp.eq.f32.partialorder %v817_v10, 8.507059e+37  ;;  %v820_v1 = vor.u32 1.1754944e-38, %v819_v11 }
 0x115   : > { %v1036_v14 = vmul.f32 %v1534_v22, %v1035_v9  ;;  %v689_v43 = vmul.f32 %v1538_v7, %v2182_v48  ;;  %v1540_v8 = vpop.eup %1539  ;;  %v939_v23 = vand.u32 2147483648, %v2193_v18  ;;  %vm694_vm14 = vweird.f32 %v1538_v7 }
 0x116   : > { %v1542_v63 = vpop.eup %1541  ;;  %vm1053_vm15 = vweird.f32 %v2197_v62  ;;  %1551 = vrcp.f32 %v2220_v50  ;;  %v2237_v45 = vadd.f32 1.0, %v1540_v8  ;;  %vm695_vm0 = vmor %vm693_vm6, %vm694_vm14  ;;  %v1057_v2 = vand.u32 2147483647, %v2197_v62 }
 0x117   : > { %v1037_v19 = vadd.f32 %v1534_v22, %v1036_v14  ;;  %v690_v55 = vsub.f32 1.0, %v689_v43  ;;  %v1544_v30 = vpop.eup %1543  ;;  %v809_v15 = vmul.f32 %v1542_v63, %v2191_v47  ;;  %vm814_vm1 = vweird.f32 %v1542_v63 }
 0x118   : > { %v1546_v20 = vpop.eup %1545  ;;  %v929_v26 = vmul.f32 %v1544_v30, %v2193_v18  ;;  %vm934_vm2 = vweird.f32 %v1544_v30  ;;  %v1059_v42 = vand.u32 2147483648, %v2197_v62  ;;  %vm815_vm4 = vmor %vm813_vm10, %vm814_vm1  ;;  %1553 = vrcp.f32 %v2237_v45 }
 0x119   : > { %v1041_v36 = vsel %vm1040_vm12, %v1534_v22, %v1037_v19  ;;  %v691_v27 = vmul.f32 %v1538_v7, %v690_v55  ;;  %v1548_v37 = vpop.eup %1547  ;;  %v810_v41 = vsub.f32 1.0, %v809_v15  ;;  %vm938_vm6 = vcmp.eq.f32.partialorder %v937_v25, 8.507059e+37 }
 0x11a   : > { %v1046_v40 = vsel %vm2206_vm5, %v1045_v5, %v1041_v36  ;;  %v1550_v57 = vpop.eup %1549  ;;  %v930_v35 = vsub.f32 1.0, %v929_v26  ;;  %v1049_v6 = vmul.f32 %v1548_v37, %v2197_v62  ;;  %vm1054_vm3 = vweird.f32 %v1548_v37  ;;  %vm935_vm5 = vmor %vm933_vm11, %vm934_vm2 }
 0x11b   : > { %v1107_v28 = vmul.f32 %v1046_v40, %v2042_v49  ;;  %v692_v34 = vadd.f32 %v1538_v7, %v691_v27  ;;  %v811_v21 = vmul.f32 %v1542_v63, %v810_v41  ;;  %v940_v13 = vor.u32 1.1754944e-38, %v939_v23  ;;  %vm1055_vm8 = vmor %vm1053_vm15, %vm1054_vm3 }
 0x11c   : > { %v931_v53 = vmul.f32 %v1544_v30, %v930_v35  ;;  %v1050_v17 = vsub.f32 1.0, %v1049_v6  ;;  %v1552_v58 = vpop.eup %1551  ;;  %v2256_v52 = vadd.f32 1.0, %v1546_v20  ;;  %v1060_v18 = vor.u32 1.1754944e-38, %v1059_v42 }
 0x11d   : > { %v1139_v31 = vpack.c.bf16 %v1107_v28, %v1107_v28  ;;  %v696_v32 = vsel %vm695_vm0, %v1538_v7, %v692_v34  ;;  %v812_v59 = vadd.f32 %v1542_v63, %v811_v21  ;;  %v704_v61 = vmul.f32 %v1552_v58, %v2220_v50 }
 0x11e   : > { %v701_v49 = vsel %vm2215_vm9, %v700_v16, %v696_v32  ;;  %v932_v44 = vadd.f32 %v1544_v30, %v931_v53  ;;  %v1051_v60 = vmul.f32 %v1548_v37, %v1050_v17  ;;  %vm1058_vm9 = vcmp.eq.f32.partialorder %v1057_v2, 8.507059e+37 }
 0x11f   : > { %1172 = vst.msk [vmem:[%s1768_s26 + $0x74] sm:$0xf] %vm1142_vm7, %v1139_v31  ;;  %v1084_v48 = vmul.f32 %v701_v49, %v2139_v54  ;;  %v816_v22 = vsel %vm815_vm4, %v1542_v63, %v812_v59  ;;  %v705_v14 = vsub.f32 1.0, %v704_v61  ;;  %1555 = vrcp.f32 %v2256_v52 }
 0x120   : > { %v821_v54 = vsel %vm2227_vm13, %v820_v1, %v816_v22  ;;  %v936_v47 = vsel %vm935_vm5, %v1544_v30, %v932_v44  ;;  %v1052_v39 = vadd.f32 %v1548_v37, %v1051_v60  ;;  %v712_v8 = vand.u32 2147483647, %v2220_v50 }
 0x121   : > { %v1116_v3 = vpack.c.bf16 %v1084_v48, %v1084_v48  ;;  %v1092_v4 = vmul.f32 %v821_v54, %v2151_v24  ;;  %v941_v9 = vsel %vm938_vm6, %v940_v13, %v936_v47  ;;  %v1554_v24 = vpop.eup %1553  ;;  %v714_v0 = vand.u32 2147483648, %v2220_v50 }
 0x122   : > { %v1100_v5 = vmul.f32 %v941_v9, %v2155_v29  ;;  %v1056_v7 = vsel %vm1055_vm8, %v1548_v37, %v1052_v39  ;;  %v706_v29 = vmul.f32 %v1552_v58, %v705_v14  ;;  %vm709_vm10 = vweird.f32 %v1552_v58 }
 0x123   : > { %1149 = vst.msk [vmem:[%s1768_s26 + $0x18] sm:$0xf] %vm1142_vm7, %v1116_v3  ;;  %v1124_v10 = vpack.c.bf16 %v1092_v4, %v1092_v4  ;;  %v1061_v11 = vsel %vm1058_vm9, %v1060_v18, %v1056_v7  ;;  %v824_v16 = vmul.f32 %v1554_v24, %v2237_v45  ;;  %v597_v19 = vadd.f32 1.0, %v1550_v57 }
 0x124   : > { %v1132_v62 = vpack.c.bf16 %v1100_v5, %v1100_v5  ;;  %v1108_v43 = vmul.f32 %v1061_v11, %v2157_v51  ;;  %v707_v55 = vadd.f32 %v1552_v58, %v706_v29  ;;  %vm708_vm11 = vweird.f32 %v2220_v50 }
 0x125   : > { %1157 = vst.msk [vmem:[%s1768_s26 + $0x38] sm:$0xf] %vm1142_vm7, %v1124_v10  ;;  %v825_v25 = vsub.f32 1.0, %v824_v16  ;;  %vm710_vm12 = vmor %vm708_vm11, %vm709_vm10  ;;  %vm713_vm13 = vcmp.eq.f32.partialorder %v712_v8, 8.507059e+37  ;;  %v715_v51 = vor.u32 1.1754944e-38, %v714_v0  ;;  %v834_v30 = vand.u32 2147483648, %v2237_v45  ;;  %v1556_v15 = vpop.eup %1555 }
 0x126   : > { %1165 = vst.msk [vmem:[%s1768_s26 + $0x58] sm:$0xf] %vm1142_vm7, %v1132_v62  ;;  %v1140_v63 = vpack.c.bf16 %v1108_v43, %v1108_v43  ;;  %1557 = vrcp.f32 %v597_v19  ;;  %v711_v12 = vsel %vm710_vm12, %v1552_v58, %v707_v55  ;;  %vm829_vm14 = vweird.f32 %v1554_v24 }
 0x127   : > { %v826_v1 = vmul.f32 %v1554_v24, %v825_v25  ;;  %v832_v23 = vand.u32 2147483647, %v2237_v45  ;;  %v716_v20 = vsel %vm713_vm13, %v715_v51, %v711_v12  ;;  %v944_v36 = vmul.f32 %v1556_v15, %v2256_v52 }
 0x128   : > { %1173 = vst.msk [vmem:[%s1768_s26 + $0x78] sm:$0xf] %vm1142_vm7, %v1140_v63  ;;  %v1085_v50 = vmul.f32 %v716_v20, %v2168_v33  ;;  %vm828_vm15 = vweird.f32 %v2237_v45  ;;  %v835_v26 = vor.u32 1.1754944e-38, %v834_v30  ;;  %v954_v57 = vand.u32 2147483648, %v2256_v52 }
 0x129   : > { %v827_v27 = vadd.f32 %v1554_v24, %v826_v1  ;;  %vm830_vm0 = vmor %vm828_vm15, %vm829_vm14  ;;  %v945_v37 = vsub.f32 1.0, %v944_v36  ;;  %vm833_vm1 = vcmp.eq.f32.partialorder %v832_v23, 8.507059e+37  ;;  %vm949_vm2 = vweird.f32 %v1556_v15 }
 0x12a   : > { %v1117_v40 = vpack.c.bf16 %v1085_v50, %v1085_v50  ;;  %v952_v6 = vand.u32 2147483647, %v2256_v52  ;;  %vm948_vm3 = vweird.f32 %v2256_v52  ;;  %v955_v31 = vor.u32 1.1754944e-38, %v954_v57 }
 0x12b   : > { %v831_v41 = vsel %vm830_vm0, %v1554_v24, %v827_v27  ;;  %v946_v35 = vmul.f32 %v1556_v15, %v945_v37  ;;  %vm950_vm4 = vmor %vm948_vm3, %vm949_vm2  ;;  %v1074_v17 = vand.u32 2147483648, %v597_v19  ;;  %v1072_v42 = vand.u32 2147483647, %v597_v19 }
 0x12c   : > { %v1558_v28 = vpop.eup %1557  ;;  %v836_v34 = vsel %vm833_vm1, %v835_v26, %v831_v41  ;;  %1150 = vst.msk [vmem:[%s1768_s26 + $0x1c] sm:$0xf] %vm1142_vm7, %v1117_v40  ;;  %vm953_vm5 = vcmp.eq.f32.partialorder %v952_v6, 8.507059e+37  ;;  %vm1068_vm8 = vweird.f32 %v597_v19 }
 0x12d   : > { %v1093_v33 = vmul.f32 %v836_v34, %v2170_v38  ;;  %v1064_v45 = vmul.f32 %v1558_v28, %v597_v19  ;;  %v947_v21 = vadd.f32 %v1556_v15, %v946_v35  ;;  %vm1069_vm6 = vweird.f32 %v1558_v28 }
 0x12e   : > { %vm1070_vm9 = vmor %vm1068_vm8, %vm1069_vm6  ;;  %v1075_v60 = vor.u32 1.1754944e-38, %v1074_v17  ;;  %vm1073_vm10 = vcmp.eq.f32.partialorder %v1072_v42, 8.507059e+37 }
 0x12f   : > { %v1125_v2 = vpack.c.bf16 %v1093_v33, %v1093_v33  ;;  %v1065_v32 = vsub.f32 1.0, %v1064_v45  ;;  %v951_v53 = vsel %vm950_vm4, %v1556_v15, %v947_v21 }
 0x130   : > { %v956_v49 = vsel %vm953_vm5, %v955_v31, %v951_v53 }
 0x131   : > { %1158 = vst.msk [vmem:[%s1768_s26 + $0x3c] sm:$0xf] %vm1142_vm7, %v1125_v2  ;;  %v1066_v59 = vmul.f32 %v1558_v28, %v1065_v32  ;;  %v1101_v38 = vmul.f32 %v956_v49, %v2179_v46 }
 0x133   : > { %v1067_v48 = vadd.f32 %v1558_v28, %v1066_v59  ;;  %v1133_v44 = vpack.c.bf16 %v1101_v38, %v1101_v38 }
 0x135   : > { %v1071_v58 = vsel %vm1070_vm9, %v1558_v28, %v1067_v48  ;;  %1166 = vst.msk [vmem:[%s1768_s26 + $0x5c] sm:$0xf] %vm1142_vm7, %v1133_v44 }
 0x136   : > { %v1076_v22 = vsel %vm1073_vm10, %v1075_v60, %v1071_v58 }
 0x137   : > { %v1109_v13 = vmul.f32 %v1076_v22, %v2185_v56 }
 0x139   : > { %v1141_v52 = vpack.c.bf16 %v1109_v13, %v1109_v13 }
 0x13b   : > { %1174 = vst.msk [vmem:[%s1768_s26 + $0x7c] sm:$0xf] %vm1142_vm7, %v1141_v52 }
 0x13c PF: > { %s13_s14 = sadd.s32 1, %s1582_s14   ;;  %s2354_s12 = smov %s1578_s13 }
 0x13d   : > { %p10_p5 = scmp.ge.s32.totalorder %s13_s14, 4   ;;  %s2355_s13 = smov %s2357_s15 }
 0x13f   :  { %12 = sbr.rel (!%p10_p5) target bundleno = 2 (0x2), region = 62 }

</bundles_post_ra>
